<compile_context>
chip_gen: v7x
topology: tpu7x:2x2x1
jax: 0.10.0
libtpu: 0.0.40
codegen_flags: <defaults>
</compile_context>

<pallas_src>
from functools import partial

import jax
import jax.numpy as jnp
from jax.experimental import pallas as pl
from jax.experimental.pallas import tpu as pltpu

_LANES = 128


def _cdiv(a, b):
    return -(-a // b)


def _round_up(a, b):
    return _cdiv(a, b) * b


def _rope_kernel(inv_ref, phase_ref, cos_ref, sin_ref, *, k):
    """One cos pass per tile; cos/sin caches rebuilt via 1-lane shifts + selects.

    Lane c of row r covers flat element (r*lanes + c) of the flattened cache
    (k = positions per row; lanes = k*dim).  inv_ref is the per-lane angular
    frequency; phase_ref = (c // dim)*inv_lane[c] + (pi/2 if c odd else 0).
    """
    tr, lanes = cos_ref.shape
    row0 = pl.program_id(0) * tr
    r = jax.lax.broadcasted_iota(jnp.int32, (tr, 1), 0)
    rowpos = ((row0 + r) * k).astype(jnp.float32)                # (tr, 1)
    ang = rowpos * inv_ref[...] + phase_ref[...]                 # (tr, lanes)
    a = jnp.cos(ang)           # even lanes: cos(theta)  |  odd lanes: -sin(theta)

    # Neighbour shifts (unambiguous direction; the wrap lanes are never selected
    # because lane 0 is even and lane lanes-1 is odd).
    left = jnp.concatenate([a[:, :1], a[:, :-1]], axis=-1)       # left[c]  = a[c-1]
    right = jnp.concatenate([a[:, 1:], a[:, -1:]], axis=-1)      # right[c] = a[c+1]

    even = (jax.lax.broadcasted_iota(jnp.int32, (tr, lanes), 1) & 1) == 0
    cos_ref[...] = jnp.where(even, a, left).astype(cos_ref.dtype)
    sin_ref[...] = jnp.where(even, -right, -a).astype(sin_ref.dtype)


def rotary_positional_embeddings(x, dim, base=10000, *, out_dtype=jnp.float32,
                                 max_block_rows=2048,
                                 target_block_bytes=8 * 1024 * 1024,
                                 min_grid_steps=2):
    """Returns (cos_cached, sin_cached), each of shape (1, 1, seq_len, dim).

    Only x.shape[1] is consumed (matching the PyTorch forward).  out_dtype may be
    set to jnp.bfloat16 to halve HBM writeback (angle math stays f32).
    """
    assert dim % 2 == 0, "RoPE dim must be even"
    assert max_block_rows % 8 == 0
    seq_len = x.shape[1]

    # Reference inv_freq buffer and its repeat-interleave (tiny XLA glue).
    inv_freq = 1.0 / (base ** (jnp.arange(0, dim, 2, dtype=jnp.float32) / dim))
    inv_rep = jnp.repeat(inv_freq, 2)                            # (dim,)

    if dim < _LANES and _LANES % dim == 0:
        # Folded lane-dense layout: 128//dim consecutive positions per 128-lane row.
        k, lanes = _LANES // dim, _LANES
        rows = _cdiv(seq_len, k)
    else:
        # Natural (seq, dim) layout; lane-dense when dim % 128 == 0.
        # TODO(synk): dims that neither divide nor are multiples of 128 still use
        # partially masked stores here (rare for RoPE; gain capped while VALU-bound).
        k, lanes = 1, dim
        rows = seq_len

    # Hoisted lane-constant tables (stay resident in VMEM across the grid).
    lane = jnp.arange(lanes, dtype=jnp.int32)
    inv_lane = jnp.tile(inv_rep, k)                              # (lanes,)
    phase = ((lane // dim).astype(jnp.float32) * inv_lane
             + (lane & 1).astype(jnp.float32) * jnp.float32(jnp.pi / 2))

    # Tile rows: byte budget (2 outputs x 2 pipeline buffers) for v5e's 16 MiB
    # default scoped VMEM, capped at max_block_rows, and split into >=min_grid_steps
    # steps so v7x's two TensorCores both get work.
    itemsize = jnp.dtype(out_dtype).itemsize
    cap_rows = max(8, (target_block_bytes // (4 * lanes * itemsize)) // 8 * 8)
    if rows <= 8:
        tr = rows
    else:
        tr = min(max_block_rows, cap_rows,
                 _round_up(_cdiv(rows, max(min_grid_steps, 1)), 8))
    grid = (_cdiv(rows, tr),)

    cos2d, sin2d = pl.pallas_call(
        partial(_rope_kernel, k=k),
        out_shape=(
            jax.ShapeDtypeStruct((rows, lanes), out_dtype),
            jax.ShapeDtypeStruct((rows, lanes), out_dtype),
        ),
        grid=grid,
        in_specs=[
            pl.BlockSpec((1, lanes), lambda i: (0, 0)),
            pl.BlockSpec((1, lanes), lambda i: (0, 0)),
        ],
        out_specs=(
            pl.BlockSpec((tr, lanes), lambda i: (i, 0)),
            pl.BlockSpec((tr, lanes), lambda i: (i, 0)),
        ),
        compiler_params=pltpu.CompilerParams(
            dimension_semantics=("parallel",)),
    )(inv_lane[None, :], phase[None, :])

    if k == 1 or seq_len % k == 0:
        # k == 1: metadata-only reshape.  Folded & divisible: single reshape, no slice.
        cos4 = cos2d.reshape(1, 1, seq_len, dim)
        sin4 = sin2d.reshape(1, 1, seq_len, dim)
    else:
        # Ragged tail: padded trailing lanes of the last row (positions >= seq_len)
        # are dropped here; keep this slice (it is what makes the padding harmless).
        n = seq_len * dim
        cos4 = cos2d.reshape(-1)[:n].reshape(1, 1, seq_len, dim)
        sin4 = sin2d.reshape(-1)[:n].reshape(1, 1, seq_len, dim)
    return cos4, sin4


def _reference(x, dim, base=10000):
    seq_len = x.shape[1]
    inv_freq = 1.0 / (base ** (jnp.arange(0, dim, 2, dtype=jnp.float32) / dim))
    t = jnp.arange(seq_len, dtype=jnp.float32)
    freqs = jnp.einsum("i,j->ij", t, inv_freq)
    emb = jnp.repeat(freqs, 2, axis=-1)
    return jnp.cos(emb)[None, None], jnp.sin(emb)[None, None]


if __name__ == "__main__":
    key = jax.random.PRNGKey(0)

    # Primary small test (folded lane-dense path, single tile, divisible seq).
    # x's values are never read; only x.shape[1] matters, as in the PyTorch forward.
    batch, seq, dim = 2, 8, 32
    x = jax.random.normal(key, (batch, seq, dim), dtype=jnp.float32)
    cos_cached, sin_cached = rotary_positional_embeddings(x, dim=dim, base=10000)
    jax.block_until_ready((cos_cached, sin_cached))
    cos_ref, sin_ref = _reference(x, dim=dim, base=10000)
    assert cos_cached.shape == (1, 1, seq, dim)
    assert sin_cached.shape == (1, 1, seq, dim)
    assert jnp.allclose(cos_cached, cos_ref, atol=5e-5, rtol=1e-3)
    assert jnp.allclose(sin_cached, sin_ref, atol=5e-5, rtol=1e-3)

    # (a) natural lane-dense path (dim % 128 == 0), 2 grid steps.
    x2 = jax.random.normal(key, (1, 16, 256), dtype=jnp.float32)
    c2, s2 = rotary_positional_embeddings(x2, dim=256)
    c2r, s2r = _reference(x2, dim=256)
    assert jnp.allclose(c2, c2r, atol=5e-5, rtol=1e-3)
    assert jnp.allclose(s2, s2r, atol=5e-5, rtol=1e-3)

    # (b) multi-tile folded path (exercises the program_id row offset) with a
    # shrunken per-block row cap.  Slightly looser tolerance: Mosaic-vs-XLA cos
    # ulps plus the hoisted-phase angle rounding grow with the angle magnitude.
    x3 = jax.random.normal(key, (1, 128, 32), dtype=jnp.float32)
    c3, s3 = rotary_positional_embeddings(x3, dim=32, max_block_rows=8)
    c3r, s3r = _reference(x3, dim=32)
    assert jnp.allclose(c3, c3r, atol=2e-4, rtol=1e-3)
    assert jnp.allclose(s3, s3r, atol=2e-4, rtol=1e-3)

    # (c) ragged tail (seq_len not a multiple of 128//dim -> wrapper slice path).
    x4 = jax.random.normal(key, (1, 10, 32), dtype=jnp.float32)
    c4, s4 = rotary_positional_embeddings(x4, dim=32)
    c4r, s4r = _reference(x4, dim=32)
    assert jnp.allclose(c4, c4r, atol=5e-5, rtol=1e-3)
    assert jnp.allclose(s4, s4r, atol=5e-5, rtol=1e-3)

    # (d) even dim that neither divides nor is a multiple of 128 (TODO path).
    x5 = jax.random.normal(key, (1, 16, 48), dtype=jnp.float32)
    c5, s5 = rotary_positional_embeddings(x5, dim=48)
    c5r, s5r = _reference(x5, dim=48)
    assert jnp.allclose(c5, c5r, atol=5e-5, rtol=1e-3)
    assert jnp.allclose(s5, s5r, atol=5e-5, rtol=1e-3)

    # (e) bf16 cache output (halved HBM writeback); angle math stays f32.
    c6, s6 = rotary_positional_embeddings(x, dim=dim, out_dtype=jnp.bfloat16)
    assert c6.dtype == jnp.bfloat16 and s6.dtype == jnp.bfloat16
    assert jnp.allclose(c6.astype(jnp.float32), cos_ref, atol=1e-2, rtol=1e-2)
    assert jnp.allclose(s6.astype(jnp.float32), sin_ref, atol=1e-2, rtol=1e-2)

    print("KERNEL_OK")
</pallas_src>

<mosaic_0001>
module attributes {stable_mosaic.version = 11 : i64} {
  func.func @_rope_kernel(%arg0: i32, %arg1: memref<1x128xf32, #tpu.memory_space<vmem>>, %arg2: memref<1x128xf32, #tpu.memory_space<vmem>>, %arg3: memref<2x128xf32, #tpu.memory_space<vmem>>, %arg4: memref<2x128xf32, #tpu.memory_space<vmem>>) attributes {dimension_semantics = [#tpu.dimension_semantics<parallel>], iteration_bounds = array<i64: 1>, scalar_prefetch = 0 : i64, scratch_operands = 0 : i64, tpu.core_type = #tpu.core_type<tc>, window_params = [{pipeline_mode = #tpu.pipeline_mode<synchronous>, transform_indices = @transform_0, window_bounds = array<i64: 1, 128>}, {pipeline_mode = #tpu.pipeline_mode<synchronous>, transform_indices = @transform_1, window_bounds = array<i64: 1, 128>}, {transform_indices = @transform_2, window_bounds = array<i64: 2, 128>}, {transform_indices = @transform_3, window_bounds = array<i64: 2, 128>}]} {
    %c2_i32 = arith.constant 2 : i32
    %0 = arith.muli %arg0, %c2_i32 : i32
    %1 = tpu.iota {dimensions = array<i32: 0>} : vector<2x1xi32>
    %2 = vector.broadcast %0 : i32 to vector<2x1xi32>
    %3 = arith.addi %2, %1 : vector<2x1xi32>
    %c4_i32 = arith.constant 4 : i32
    %4 = vector.broadcast %c4_i32 : i32 to vector<2x1xi32>
    %5 = arith.muli %3, %4 : vector<2x1xi32>
    %6 = arith.sitofp %5 : vector<2x1xi32> to vector<2x1xf32>
    %c0 = arith.constant 0 : index
    %c0_0 = arith.constant 0 : index
    %7 = vector.load %arg1[%c0, %c0_0] : memref<1x128xf32, #tpu.memory_space<vmem>>, vector<1x128xf32>
    %8 = vector.broadcast %6 : vector<2x1xf32> to vector<2x128xf32>
    %9 = vector.broadcast %7 : vector<1x128xf32> to vector<2x128xf32>
    %10 = arith.mulf %8, %9 : vector<2x128xf32>
    %c0_1 = arith.constant 0 : index
    %c0_2 = arith.constant 0 : index
    %11 = vector.load %arg2[%c0_1, %c0_2] : memref<1x128xf32, #tpu.memory_space<vmem>>, vector<1x128xf32>
    %12 = vector.broadcast %11 : vector<1x128xf32> to vector<2x128xf32>
    %13 = arith.addf %10, %12 : vector<2x128xf32>
    %14 = math.cos %13 : vector<2x128xf32>
    %15 = vector.extract_strided_slice %14 {offsets = [0, 0], sizes = [2, 1], strides = [1, 1]} : vector<2x128xf32> to vector<2x1xf32>
    %16 = vector.extract_strided_slice %14 {offsets = [0, 0], sizes = [2, 127], strides = [1, 1]} : vector<2x128xf32> to vector<2x127xf32>
    %17 = tpu.concatenate %15, %16 in 1 : vector<2x1xf32>, vector<2x127xf32> -> vector<2x128xf32>
    %18 = vector.extract_strided_slice %14 {offsets = [0, 1], sizes = [2, 127], strides = [1, 1]} : vector<2x128xf32> to vector<2x127xf32>
    %19 = vector.extract_strided_slice %14 {offsets = [0, 127], sizes = [2, 1], strides = [1, 1]} : vector<2x128xf32> to vector<2x1xf32>
    %20 = tpu.concatenate %18, %19 in 1 : vector<2x127xf32>, vector<2x1xf32> -> vector<2x128xf32>
    %21 = tpu.iota {dimensions = array<i32: 1>} : vector<2x128xi32>
    %c1_i32 = arith.constant 1 : i32
    %22 = vector.broadcast %c1_i32 : i32 to vector<2x128xi32>
    %23 = arith.andi %21, %22 : vector<2x128xi32>
    %c0_i32 = arith.constant 0 : i32
    %24 = vector.broadcast %c0_i32 : i32 to vector<2x128xi32>
    %25 = arith.cmpi eq, %23, %24 : vector<2x128xi32>
    %26 = arith.select %25, %14, %17 : vector<2x128xi1>, vector<2x128xf32>
    %c0_3 = arith.constant 0 : index
    %c0_4 = arith.constant 0 : index
    %27 = vector.load %arg3[%c0_3, %c0_4] : memref<2x128xf32, #tpu.memory_space<vmem>>, vector<2x128xf32>
    tpu.vector_store %arg3[%c0_3, %c0_4], %26 {strides = array<i32>} : memref<2x128xf32, #tpu.memory_space<vmem>>, vector<2x128xf32>,
    %cst = arith.constant 0.000000e+00 : f32
    %28 = vector.broadcast %cst : f32 to vector<2x128xf32>
    %29 = arith.subf %28, %20 : vector<2x128xf32>
    %cst_5 = arith.constant 0.000000e+00 : f32
    %30 = vector.broadcast %cst_5 : f32 to vector<2x128xf32>
    %31 = arith.subf %30, %14 : vector<2x128xf32>
    %32 = arith.select %25, %29, %31 : vector<2x128xi1>, vector<2x128xf32>
    %c0_6 = arith.constant 0 : index
    %c0_7 = arith.constant 0 : index
    %33 = vector.load %arg4[%c0_6, %c0_7] : memref<2x128xf32, #tpu.memory_space<vmem>>, vector<2x128xf32>
    tpu.vector_store %arg4[%c0_6, %c0_7], %32 {strides = array<i32>} : memref<2x128xf32, #tpu.memory_space<vmem>>, vector<2x128xf32>,
    return
  }
  func.func @transform_0(%arg0: i32) -> (i32, i32) {
    %c0_i32 = arith.constant 0 : i32
    %c0_i32_0 = arith.constant 0 : i32
    %c0_i32_1 = arith.constant 0 : i32
    return %c0_i32, %c0_i32_0 : i32, i32
  }
  func.func @transform_1(%arg0: i32) -> (i32, i32) {
    %c0_i32 = arith.constant 0 : i32
    %c0_i32_0 = arith.constant 0 : i32
    %c0_i32_1 = arith.constant 0 : i32
    return %c0_i32, %c0_i32_0 : i32, i32
  }
  func.func @transform_2(%arg0: i32) -> (i32, i32) {
    %c0_i32 = arith.constant 0 : i32
    %c0_i32_0 = arith.constant 0 : i32
    return %arg0, %c0_i32 : i32, i32
  }
  func.func @transform_3(%arg0: i32) -> (i32, i32) {
    %c0_i32 = arith.constant 0 : i32
    %c0_i32_0 = arith.constant 0 : i32
    return %arg0, %c0_i32 : i32, i32
  }
}

</mosaic_0001>

<bundles_post_ra>
// kernel: tpu_custom_call.1
= control target key start
LH: loop header
LB: loop body
LE: loop exit
PB: predicated region body
PF: predicated region fallthrough
CT: control target
= control target key end

     0   :  { %9 = vsyncpa [#allocation3], 0  ;;  %s408_s0 = inlined_call_operand.hbm [shape: f32[1,128], index: 0, kind: input, shape index: {}]   ;;  %s409_s1 = inlined_call_operand.vmem [shape: f32[1,128], index: 1, kind: input, shape index: {}]   ;;  %s410_s2 = inlined_call_operand.hbm [shape: f32[2,128], index: 2, kind: output, shape index: {0}]   ;;  %s411_s3 = inlined_call_operand.hbm [shape: f32[2,128], index: 3, kind: output, shape index: {1}]  }
   0x1   :  { %10 = vsyncpa [#allocation4], 0 }
   0x2   :  { %11 = vsyncpa [#allocation7], 0  ;;  %s300_s12 = smov [#allocation2]   ;;  %s228_s16 = scalar_lea.hbm %s408_s0, 16 }
   0x3   :  { %s18_s13 = sshll.u32 %s300_s12, 4  ;;  %p229_p0 = scmp.ne.s32.totalorder %s408_s0, %s228_s16  ;;  %s19_s13 = int_to_ptr.vmem [resolvable:$true] %s18_s13 }
   0x4   :  { %p232_p1 = scmp.lt.u32.totalorder %s228_s16, %s408_s0 }
   0x6   :  { %p234_p2 = pnand %p232_p1, %p229_p0 }
   0x8   :  { %237 = shalt.err (!%p234_p2)
}
   0x9   :  { %s238_s21 = scalar_lea.vmem %s19_s13, 16  ;;  %s242_s22 = scalar_lea.vmem %s19_s13, 32 }
   0xa   :  { %p239_p3 = scmp.ne.s32.totalorder %s19_s13, %s238_s21  ;;  %p243_p4 = scmp.lt.s32.totalorder %s19_s13, %s19_s13 }
   0xb   :  { %p244_p5 = scmp.lt.s32.totalorder %s242_s22, %s238_s21 }
   0xd   :  { %p245_p6 = por %p244_p5, %p243_p4 }
   0xf   :  { %p246_p7 = pnand %p245_p6, %p239_p3 }
  0x11   :  { %249 = shalt.err (!%p246_p7)
}
  0x12   :  { %21 = dma.hbm_to_vmem [thread:$0]  %s408_s0, 16, %s19_s13, [#allocation3]  }
  0x13   :  { %294 = dma.done.wait [#allocation3], 16  }
  0x14   :  { %295 = vsyncadd [#allocation3], 4294967280  ;;  %v28_v0 = vlaneseq  ;;  %v203_v4 = vld [vmem:[#allocation2] ss:$0 sm:$0xff]  ;;  %v301_v19 = vmov 683565275  }
  0x15   :  { %v204_v5 = vld [vmem:[%s409_s1] ss:$0 sm:$0xff]  ;;  %v302_v21 = vmov 2475754826   ;;  %v303_v23 = vmov 2131351028  }
  0x16   :  { %v29_v1 = vshrl.u32 %v28_v0, 7  ;;  %v304_v25 = vmov 2102212464   ;;  %v305_v27 = vmov 920167782   ;;  %s307_s0 = smov 127  }
  0x17   :  { %v306_v34 = vmov 1326507024   ;;  %s308_s1 = smov 1   ;;  %vm162_vm13 = vcmask 1039360   ;;  %s309_s27 = smov [#allocation6]   ;;  %vm157_vm15 = vcmask 7168  }
  0x18   :  { %v32_v2 = vmul.u32 4, %v29_v1  ;;  %s190_s28 = sshll.u32 %s309_s27, 4  ;;  %s310_s29 = smov [#allocation5]   ;;  %s191_s28 = int_to_ptr.vmem [resolvable:$true] %s190_s28 }
  0x19   :  { %s180_s30 = sshll.u32 %s310_s29, 4  ;;  %s250_s4 = scalar_lea.vmem %s191_s28, 32  ;;  %s375_s30 = int_to_ptr.vmem [resolvable:$true] %s180_s30 }
  0x1a   :  { %v33_v3 = vcvt.s32.f32 %v32_v2  ;;  %p251_p8 = scmp.ne.s32.totalorder %s191_s28, %s250_s4  ;;  %p255_p9 = scmp.lt.s32.totalorder %s191_s28, %s191_s28 }
  0x1b   :  { %p256_p10 = scmp.lt.s32.totalorder %s250_s4, %s250_s4 }
  0x1c   :  { %v41_v6 = vmul.f32 %v203_v4, %v33_v3 }
  0x1d   :  { %p257_p11 = por %p256_p10, %p255_p9 }
  0x1e   :  { %v347_v7 = vadd.f32 %v204_v5, %v41_v6 }
  0x1f   :  { %p258_p12 = pnand %p257_p11, %p251_p8 }
  0x20   :  { %v53_v8 = vand.u32 2139095040, %v347_v7  ;;  %v50_v10 = vand.u32 2147483647, %v347_v7  ;;  %vm52_vm7 = vcmp.lt.s32.totalorder %v347_v7, 0  ;;  %vm142_vm12 = vweird.f32 %v347_v7 }
  0x22   :  { %v54_v9 = vshrl.u32 %v53_v8, 23  ;;  %v57_v13 = vand.u32 8388607, %v50_v10  ;;  %vm51_vm8 = vcmp.le.f32.partialorder %v50_v10, 0.7853982 }
  0x24   :  { %v205_v11 = vadd.s32 4294967169, %v54_v9  ;;  %v58_v16 = vor.u32 8388608, %v57_v13 }
  0x26   :  { %v60_v12 = vadd.s32 1, %v205_v11  ;;  %v98_v36 = vshll.u32 %v58_v16, 8 }
  0x28   :  { %vm61_vm0 = vcmp.gt.s32.totalorder %v60_v12, 0 }
  0x29   :  { %v62_v14 = vsel %vm61_vm0, %v60_v12, 0 }
  0x2a   :  { %v64_v15 = vand.u32 31, %v62_v14  ;;  %v63_v17 = vshrl.u32 %v62_v14, 5 }
  0x2c   :  { %v65_v18 = vsub.s32 32, %v64_v15  ;;  %v67_v20 = vshll.u32 %v301_v19, %v64_v15  ;;  %v70_v22 = vshll.u32 %v302_v21, %v64_v15  ;;  %v73_v24 = vshll.u32 %v303_v23, %v64_v15 }
  0x2d   :  { %v76_v26 = vshll.u32 %v304_v25, %v64_v15  ;;  %v79_v28 = vshll.u32 %v305_v27, %v64_v15  ;;  %vm82_vm1 = vcmp.lt.s32.totalorder %v63_v17, 1  ;;  %vm85_vm2 = vcmp.lt.s32.totalorder %v63_v17, 4 }
  0x2e   :  { %v66_v29 = vshrl.u32 %v301_v19, %v65_v18  ;;  %v68_v30 = vshrl.u32 %v302_v21, %v65_v18  ;;  %v71_v31 = vshrl.u32 %v303_v23, %v65_v18  ;;  %v74_v32 = vshrl.u32 %v304_v25, %v65_v18 }
  0x2f   :  { %v77_v33 = vshrl.u32 %v305_v27, %v65_v18  ;;  %v80_v35 = vshrl.u32 %v306_v34, %v65_v18  ;;  %vm83_vm3 = vcmp.lt.s32.totalorder %v63_v17, 2  ;;  %vm84_vm4 = vcmp.lt.s32.totalorder %v63_v17, 3 }
  0x30   :  { %v69_v37 = vor.u32 %v68_v30, %v67_v20  ;;  %v72_v38 = vor.u32 %v71_v31, %v70_v22  ;;  %v75_v39 = vor.u32 %v74_v32, %v73_v24 }
  0x31   :  { %v78_v40 = vor.u32 %v77_v33, %v76_v26  ;;  %v81_v41 = vor.u32 %v80_v35, %v79_v28 }
  0x32   :  { %v86_v42 = vsel %vm82_vm1, %v66_v29, %v69_v37  ;;  %v87_v43 = vsel %vm85_vm2, %v75_v39, 2102212464  ;;  %v90_v44 = vsel %vm82_vm1, %v69_v37, %v72_v38  ;;  %v94_v45 = vsel %vm82_vm1, %v72_v38, %v75_v39 }
  0x33   :  { %v88_v46 = vsel %vm84_vm4, %v72_v38, %v87_v43  ;;  %v91_v47 = vsel %vm85_vm2, %v78_v40, 920167782  ;;  %v95_v48 = vsel %vm85_vm2, %v81_v41, 1326507024 }
  0x34   :  { %v92_v49 = vsel %vm84_vm4, %v75_v39, %v91_v47  ;;  %v96_v50 = vsel %vm84_vm4, %v78_v40, %v95_v48  ;;  %v89_v51 = vsel %vm83_vm3, %v86_v42, %v88_v46 }
  0x35   :  { %v93_v52 = vsel %vm83_vm3, %v90_v44, %v92_v49  ;;  %v97_v53 = vsel %vm83_vm3, %v94_v45, %v96_v50  ;;  %v105_v58 = vmul.u32 %v98_v36, %v89_v51 }
  0x36   :  { %v353_v54 = vmul.u32.u64.low %v98_v36, %v97_v53  ;;  %v354_v55 = vmul.u32.u64.high %v98_v36, %v97_v53, %v353_v54  ;;  %v356_v56 = vmul.u32.u64.low %v98_v36, %v93_v52  ;;  %v357_v57 = vmul.u32.u64.high %v98_v36, %v93_v52, %v356_v56 }
  0x37   :  { %v165_v36 = vand.u32 127, %v28_v0 }
  0x38   :  { %vm107_vm5 = vc.u32 %v354_v55, %v356_v56  ;;  %v108_v59 = vadd.s32 1, %v357_v57  ;;  %v106_v8 = vadd.s32 %v356_v56, %v354_v55 }
  0x39   :  { %v166_v37 = vand.u32 1, %v165_v36 }
  0x3a   :  { %v109_v60 = vsel %vm107_vm5, %v108_v59, %v357_v57 }
  0x3b   :  { %v110_v61 = vadd.s32 %v109_v60, %v105_v58  ;;  %vm369_vm14 = vcmp.eq.s32.totalorder %v166_v37, 0 }
  0x3d   :  { %v111_v62 = vadd.s32 536870912, %v110_v61 }
  0x3f   :  { %v112_v63 = vshrl.u32 %v111_v62, 30 }
  0x41   :  { %v113_v1 = vshll.u32 %v112_v63, 30  ;;  %v136_v23 = vsub.s32 4, %v112_v63 }
  0x43   :  { %v114_v2 = vsub.s32 %v110_v61, %v113_v1  ;;  %v137_v26 = vsel %vm52_vm7, %v136_v23, %v112_v63 }
  0x44   :  { %v139_v27 = vsel %vm51_vm8, 0, %v137_v26 }
  0x45   :  { %v116_v3 = vsub.s32 0, %v114_v2  ;;  %v143_v28 = vand.u32 3, %v139_v27 }
  0x47   :  { %v206_v4 = vmin.u32 %v116_v3, %v114_v2  ;;  %vm148_vm9 = vcmp.eq.s32.totalorder %v143_v28, 2  ;;  %vm145_vm10 = vcmp.eq.s32.totalorder %v143_v28, 0  ;;  %vm144_vm11 = vcmp.lt.s32.totalorder %v143_v28, 2 }
  0x49   :  { %v118_v5 = vclz %v206_v4 }
  0x4b   :  { %v207_v6 = vadd.s32 4294967294, %v118_v5 }
  0x4d   :  { %vm208_vm6 = vcmp.lt.s32.totalorder %v207_v6, 0 }
  0x4e   :  { %v121_v9 = vsel %vm208_vm6, 0, %v207_v6 }
  0x4f   :  { %v122_v11 = vsub.s32 32, %v121_v9  ;;  %v123_v12 = vshll.u32 %v114_v2, %v121_v9  ;;  %v126_v13 = vsub.s32 4294967266, %v121_v9 }
  0x51   :  { %v124_v14 = vshrl.u32 %v106_v8, %v122_v11  ;;  %v127_v15 = vadd.s32 127, %v126_v13 }
  0x53   :  { %v125_v16 = vor.u32 %v124_v14, %v123_v12  ;;  %v128_v17 = vshll.u32 %v127_v15, 23 }
  0x55   :  { %v129_v18 = vor.u32 4788187, %v128_v17  ;;  %v132_v19 = vcvt.s32.f32 %v125_v16 }
  0x57   :  { %v130_v20 = vand.u32 2147483647, %v129_v18 }
  0x59   :  { %v133_v21 = vmul.f32 %v132_v19, %v130_v20 }
  0x5b   :  { %v134_v22 = vxor.u32 2147483648, %v133_v21 }
  0x5d   :  { %v135_v24 = vsel %vm52_vm7, %v134_v22, %v133_v21 }
  0x5e   :  { %v138_v25 = vsel %vm51_vm8, %v347_v7, %v135_v24 }
  0x5f   :  { %224 = vcosq.f32 %v138_v25 }
  0x60   :  { %226 = vsinq.f32 %v138_v25 }
  0x69   :  { %v225_v29 = vpop.eup %224 }
  0x6a   :  { %v227_v30 = vpop.eup %226  ;;  %v149_v31 = vxor.u32 2147483648, %v225_v29 }
  0x6b   :  { %v146_v32 = vxor.u32 2147483648, %v227_v30 }
  0x6c   :  { %v150_v10 = vsel %vm148_vm9, %v149_v31, %v227_v30 }
  0x6d   :  { %v147_v33 = vsel %vm145_vm10, %v225_v29, %v146_v32 }
  0x6e   :  { %v151_v34 = vsel %vm144_vm11, %v147_v33, %v150_v10 }
  0x6f   :  { %v152_v35 = vsel %vm142_vm12, nan, %v151_v34 }
  0x70   :  { %159 = vrot.lane.b32.xlu0 %v152_v35, %s307_s0  ;;  %v171_v39 = vsub.f32 0.0, %v152_v35 }
  0x74   :  { %154 = vrot.lane.b32.xlu0 %v152_v35, %s308_s1 }
  0xe2   :  { %v160_v38 = vpop.permute.xlu0 %159 }
  0xe3   :  { %v163_v40 = vsel %vm162_vm13, %v160_v38, %v152_v35 }
  0xe4   :  { %v170_v7 = vsub.f32 0.0, %v163_v40 }
  0xe6   :  { %v155_v42 = vpop.permute.xlu0 %154  ;;  %v172_v0 = vsel %vm369_vm14, %v170_v7, %v171_v39 }
  0xe7   :  { %v158_v43 = vsel %vm157_vm15, %v152_v35, %v155_v42  ;;  %173 = vst [vmem:[#allocation6] sm:$0x3] %v172_v0 }
  0xe8   :  { %v168_v44 = vsel %vm369_vm14, %v152_v35, %v158_v43 }
  0xe9   :  { %261 = shalt.err (!%p258_p12)
}
  0xea   :  { %s262_s7 = scalar_lea.hbm %s411_s3, 32 }
  0xeb   :  { %p263_p13 = scmp.ne.s32.totalorder %s411_s3, %s262_s7  ;;  %p266_p0 = scmp.lt.u32.totalorder %s262_s7, %s411_s3 }
  0xed   :  { %p268_p1 = pnand %p266_p0, %p263_p13 }
  0xef   :  { %271 = shalt.err (!%p268_p1)
}
  0xf0   :  { %193 = dma.vmem_to_hbm [thread:$0]  %s191_s28, 32, %s411_s3, [#allocation7]   ;;  %169 = vst [vmem:[#allocation5] sm:$0x3] %v168_v44 }
  0xf1   :  { %s272_s14 = scalar_lea.vmem %s375_s30, 32  ;;  %p277_p3 = scmp.lt.s32.totalorder %s375_s30, %s375_s30 }
  0xf2   :  { %p273_p2 = scmp.ne.s32.totalorder %s375_s30, %s272_s14  ;;  %p278_p4 = scmp.lt.s32.totalorder %s272_s14, %s272_s14 }
  0xf4   :  { %p279_p5 = por %p278_p4, %p277_p3 }
  0xf6   :  { %p280_p6 = pnand %p279_p5, %p273_p2 }
  0xf8   :  { %283 = shalt.err (!%p280_p6)
}
  0xf9   :  { %s284_s17 = scalar_lea.hbm %s410_s2, 32 }
  0xfa   :  { %p285_p7 = scmp.ne.s32.totalorder %s410_s2, %s284_s17  ;;  %p288_p8 = scmp.lt.u32.totalorder %s284_s17, %s410_s2 }
  0xfc   :  { %p290_p9 = pnand %p288_p8, %p285_p7 }
  0xfe   :  { %293 = shalt.err (!%p290_p9)
}
  0xff   :  { %183 = dma.vmem_to_hbm [thread:$0]  %s375_s30, 32, %s410_s2, [#allocation4]  }
 0x100   :  { %296 = dma.done.wait [#allocation4], 32  }
 0x101   :  { %297 = vsyncadd [#allocation4], 4294967264 }
 0x102   :  { %298 = dma.done.wait [#allocation7], 32  }
 0x103   :  { %299 = vsyncadd [#allocation7], 4294967264 }
 0x104   :  { %200 = vsyncpa [#allocation3], 1 }
 0x105   :  { %201 = vsyncpa [#allocation4], 1 }
 0x106   :  { %202 = vsyncpa [#allocation7], 1 }

</bundles_post_ra>
